<compile_context>
chip_gen: v5e
topology: v5e:2x2
jax: 0.10.0
libtpu: 0.0.40
codegen_flags: <defaults>
</compile_context>

<pallas_src>
import jax
import jax.numpy as jnp
import numpy as np
from jax.experimental import pallas as pl
from jax.experimental.pallas import tpu as pltpu

_HI = jax.lax.Precision.HIGHEST


# ----------------------------------------------------------------------------
# Fused kernel: out = x @ W_eff + bias   (whole forward up to the T5 call)
#   x:    (rows, J*F)     rows = B*S (or a row tile of it)
#   W:    (J*F, S_out)
#   bias: (rows, S_out)
# ----------------------------------------------------------------------------
def _folded_embed_kernel(x_ref, w_ref, b_ref, o_ref):
    o_ref[...] = (
        jnp.dot(x_ref[...], w_ref[...], preferred_element_type=jnp.float32)
        + b_ref[...]
    )


def _folded_matmul(x2d, w_eff, bias2d, *, row_block=None):
    """out2d = x2d @ w_eff + bias2d via Pallas."""
    BS, K = x2d.shape
    S_out = w_eff.shape[1]

    if row_block is None or row_block >= BS:
        # Everything fits VMEM at these sizes: single block, no grid loop.
        return pl.pallas_call(
            _folded_embed_kernel,
            out_shape=jax.ShapeDtypeStruct((BS, S_out), jnp.float32),
            in_specs=[pl.BlockSpec(memory_space=pltpu.MemorySpace.VMEM)] * 3,
            out_specs=pl.BlockSpec(memory_space=pltpu.MemorySpace.VMEM),
        )(x2d, w_eff, bias2d)

    # Row-tiled path for larger B*S (and v7x dual-TC via "parallel" axis).
    assert BS % row_block == 0 and row_block % 8 == 0
    grid = (BS // row_block,)
    return pl.pallas_call(
        _folded_embed_kernel,
        out_shape=jax.ShapeDtypeStruct((BS, S_out), jnp.float32),
        grid_spec=pltpu.PrefetchScalarGridSpec(
            num_scalar_prefetch=0,
            grid=grid,
            in_specs=[
                pl.BlockSpec((row_block, K), lambda i: (i, 0)),
                pl.BlockSpec((K, S_out), lambda i: (0, 0)),
                pl.BlockSpec((row_block, S_out), lambda i: (i, 0)),
            ],
            out_specs=pl.BlockSpec((row_block, S_out), lambda i: (i, 0)),
        ),
        compiler_params=pltpu.CompilerParams(
            dimension_semantics=("parallel",)),
    )(x2d, w_eff, bias2d)


# ----------------------------------------------------------------------------
# One-time parameter fold (pure-JAX, runs on the parameters only).
# ----------------------------------------------------------------------------
def _fold_params(params, *, num_features, embed_size, num_joints):
    F, E, J = num_features, embed_size, num_joints
    w_sp = params["w_sp"]            # (F, E)
    b_sp = params["b_sp"]            # (E,)
    temporal = params["temporal"]    # (S, E)
    positional = params["positional"]  # (J, E)
    w_fc = params["w_fc"]            # (J*E, S_out)
    b_fc = params["b_fc"]            # (S_out,)
    S = temporal.shape[0]
    S_out = w_fc.shape[1]

    # W_eff[j*F + f, :] = sum_e w_sp[f, e] * w_fc[j*E + e, :]
    w_fc_r = w_fc.reshape(J, E, S_out)
    w_eff = jnp.einsum("fe,jeo->jfo", w_sp, w_fc_r,
                       precision=_HI).reshape(J * F, S_out)

    # A[s, j, e] = b_sp[e] + temporal[s, e] + positional[j, e]
    add = (b_sp[None, None, :] + temporal[:, None, :]
           + positional[None, :, :]).reshape(S, J * E)
    bias_eff = jnp.dot(add, w_fc, precision=_HI) + b_fc[None, :]  # (S, S_out)
    return w_eff, bias_eff


# ----------------------------------------------------------------------------
# Wrapper reproducing ModifiedT5Model.forward(..., use_embeds=True) up to the
# T5 call (returns `input_embeds`).
# ----------------------------------------------------------------------------
def modified_t5_embeds(input_ids, params, *, num_features=3, embed_size=32,
                       row_block=None):
    B, S, feat = input_ids.shape
    assert feat % num_features == 0
    J = feat // num_features

    w_eff, bias_eff = _fold_params(params, num_features=num_features,
                                   embed_size=embed_size, num_joints=J)
    S_out = w_eff.shape[1]

    # Collapse batch into rows: one lane-dense slab instead of a (B,) grid.
    x2d = input_ids.reshape(B * S, J * num_features)
    bias2d = jnp.broadcast_to(bias_eff[None], (B, S, S_out)).reshape(B * S, S_out)

    out2d = _folded_matmul(x2d, w_eff, bias2d, row_block=row_block)
    return out2d.reshape(B, S, S_out)


# ----------------------------------------------------------------------------
# Pure-JAX reference (mirrors the PyTorch math, unfused) for correctness.
# ----------------------------------------------------------------------------
def reference_embeds(input_ids, params, *, num_features=3, embed_size=32):
    B, S, feat = input_ids.shape
    J = feat // num_features
    E = embed_size
    x = input_ids.reshape(B * S, J, num_features)
    spatial = (jnp.einsum("njf,fe->nje", x, params["w_sp"], precision=_HI)
               + params["b_sp"]).reshape(B, S, J * E)
    temporal = jnp.tile(params["temporal"], (1, J))[None]           # (1,S,J*E)
    positional = params["positional"].reshape(1, 1, J * E)          # (1,1,J*E)
    combined = spatial + temporal + positional
    return (jnp.einsum("bsk,ko->bso", combined, params["w_fc"], precision=_HI)
            + params["b_fc"])


if __name__ == "__main__":
    # Small shapes consistent with the module's forward.
    B, S, J, F, E = 2, 8, 4, 3, 32          # seq_length=8, num_joints=4
    S_out = S                                # fc maps to seq_length

    key = jax.random.PRNGKey(0)
    keys = jax.random.split(key, 8)
    params = {
        "w_sp": jax.random.normal(keys[0], (F, E), jnp.float32) * 0.1,
        "b_sp": jax.random.normal(keys[1], (E,), jnp.float32) * 0.1,
        "temporal": jax.random.normal(keys[2], (S, E), jnp.float32) * 0.1,
        "positional": jax.random.normal(keys[3], (J, E), jnp.float32) * 0.1,
        "w_fc": jax.random.normal(keys[4], (J * E, S_out), jnp.float32) * 0.1,
        "b_fc": jax.random.normal(keys[5], (S_out,), jnp.float32) * 0.1,
    }

    input_ids = jax.random.normal(keys[6], (B, S, J * F), jnp.float32)
    attention_mask = jnp.ones((B, S), jnp.float32)  # consumed by T5 (not implemented)

    ref = reference_embeds(input_ids, params, num_features=F, embed_size=E)

    # Single-block (grid=()) fused path.
    out = modified_t5_embeds(input_ids, params, num_features=F, embed_size=E)
    out = jax.block_until_ready(out)
    np.testing.assert_allclose(np.asarray(out), np.asarray(ref),
                               rtol=1e-4, atol=1e-4)

    # Row-tiled path (pattern used when B*S is large / on v7x with 2 TCs).
    out_tiled = modified_t5_embeds(input_ids, params, num_features=F,
                                   embed_size=E, row_block=8)
    out_tiled = jax.block_until_ready(out_tiled)
    np.testing.assert_allclose(np.asarray(out_tiled), np.asarray(ref),
                               rtol=1e-4, atol=1e-4)

    print("KERNEL_OK")
</pallas_src>

<mosaic_0001>
module attributes {stable_mosaic.version = 11 : i64} {
  func.func @_folded_embed_kernel(%arg0: memref<16x12xf32, #tpu.memory_space<vmem>>, %arg1: memref<12x8xf32, #tpu.memory_space<vmem>>, %arg2: memref<16x8xf32, #tpu.memory_space<vmem>>, %arg3: memref<16x8xf32, #tpu.memory_space<vmem>>) attributes {dimension_semantics = [], scalar_prefetch = 0 : i64, scratch_operands = 0 : i64, tpu.core_type = #tpu.core_type<tc>} {
    %c0 = arith.constant 0 : index
    %c0_0 = arith.constant 0 : index
    %0 = vector.load %arg0[%c0, %c0_0] : memref<16x12xf32, #tpu.memory_space<vmem>>, vector<16x12xf32>
    %c0_1 = arith.constant 0 : index
    %c0_2 = arith.constant 0 : index
    %1 = vector.load %arg1[%c0_1, %c0_2] : memref<12x8xf32, #tpu.memory_space<vmem>>, vector<12x8xf32>
    %cst = arith.constant dense<0.000000e+00> : vector<16x8xf32>
    %2 = tpu.matmul %0, %1, %cst {dimension_numbers = #tpu.dot_dimension_numbers<[1], [0], [0], [1], [0, 0, 1, 1], [], []>} : vector<16x12xf32>, vector<12x8xf32>, vector<16x8xf32> -> vector<16x8xf32>
    %c0_3 = arith.constant 0 : index
    %c0_4 = arith.constant 0 : index
    %3 = vector.load %arg2[%c0_3, %c0_4] : memref<16x8xf32, #tpu.memory_space<vmem>>, vector<16x8xf32>
    %4 = arith.addf %2, %3 : vector<16x8xf32>
    %c0_5 = arith.constant 0 : index
    %c0_6 = arith.constant 0 : index
    %5 = vector.load %arg3[%c0_5, %c0_6] : memref<16x8xf32, #tpu.memory_space<vmem>>, vector<16x8xf32>
    tpu.vector_store %arg3[%c0_5, %c0_6], %4 {strides = array<i32>} : memref<16x8xf32, #tpu.memory_space<vmem>>, vector<16x8xf32>,
    return
  }
}

</mosaic_0001>

<bundles_post_ra>
// kernel: tpu_custom_call.1
= control target key start
LH: loop header
LB: loop body
LE: loop exit
PB: predicated region body
PF: predicated region fallthrough
CT: control target
= control target key end

     0   :  { %vm27_vm0 = vcmask 1043456   ;;  %vm20_vm1 = vcmask 97280   ;;  %vm54_vm2 = vcmask 64512   ;;  %s110_s1 = inlined_call_operand.vmem [shape: f32[12,8], index: 1, kind: input, shape index: {}]   ;;  %s111_s0 = inlined_call_operand.vmem [shape: f32[16,12], index: 0, kind: input, shape index: {}]   ;;  %s112_s2 = inlined_call_operand.vmem [shape: f32[16,8], index: 2, kind: input, shape index: {}]   ;;  %s113_s3 = inlined_call_operand.vmem [shape: f32[16,8], index: 3, kind: output, shape index: {}]  }
   0x1   :  { %v17_v0 = vld [vmem:[%s110_s1 + $0x8] sm:$0xf]  ;;  %v16_v1 = vld [vmem:[%s110_s1] sm:$0xff] }
   0x2   :  { %61 = vmatpush.msk.msra.mxu0 %vm27_vm0, %v17_v0  ;;  %64 = vmatpush.msk.msra.mxu1 %vm27_vm0, %v17_v0  ;;  %v14_v2 = vld [vmem:[%s111_s0] sm:$0xff]  ;;  %v15_v3 = vld [vmem:[%s111_s0 + $0x8] sm:$0xff] }
   0x3   :  { %v18_v4 = vld [vmem:[%s112_s2] sm:$0xff]  ;;  %v19_v5 = vld [vmem:[%s112_s2 + $0x8] sm:$0xff] }
   0x4   :  { %46 = vmatpush.msra.mxu0 %v16_v1  ;;  %65 = vmatpush.msra.mxu1 %v16_v1 }
   0x5   :  { %62 = vmatmul.msk.f32.vlgmr.msra.gmra.mxu0 %vm20_vm1, %v14_v2  ;;  %63 = vmatmul.msk.f32.vlgmr.msra.gmra.mxu1 %vm20_vm1, %v15_v3 }
  0x82   :  { %v48_v6 = vpop.f32.mrf.mxu0  ;;  %v51_v7 = vpop.f32.mrf.mxu1 }
  0x83   :  { %v49_v8 = vadd.f32 %v48_v6, %v18_v4  ;;  %v52_v9 = vadd.f32 %v51_v7, %v19_v5 }
  0x85   :  { %55 = vst.msk [vmem:[%s113_s3] sm:$0xff] %vm54_vm2, %v49_v8 }
  0x86   :  { %56 = vst.msk [vmem:[%s113_s3 + $0x8] sm:$0xff] %vm54_vm2, %v52_v9 }

</bundles_post_ra>
